<compile_context>
chip_gen: v5e
topology: v5e:2x2
jax: 0.10.0
libtpu: 0.0.40
codegen_flags: <defaults>
</compile_context>

<pallas_src>
import functools

import jax
import jax.numpy as jnp
from jax.experimental import pallas as pl
from jax.experimental.pallas import tpu as pltpu

_TM_CANDIDATES = (256, 128, 64, 32, 16, 8)
_HEADROOM_BYTES = 8 * 2**20      # planning headroom below physical VMEM
_DEFAULT_VMEM_CAP = 64 * 2**20   # conservative (v7x per-TensorCore) fallback


def _round_up(x, m):
    return (x + m - 1) // m * m


def _pad_bias_value(dtype):
    # Large negative logit for padded vocab columns -> exp() == 0 in f32 math,
    # clamped to the bias dtype's representable range (e.g. float16).
    return max(float(jnp.finfo(dtype).min), -1e30)


def _vmem_capacity_bytes():
    try:
        return int(pltpu.get_tpu_info().vmem_capacity_bytes)
    except Exception:
        return _DEFAULT_VMEM_CAP


# ---------------------------------------------------------------------------
# Kernels
# ---------------------------------------------------------------------------
def _resident_kernel(x_ref, w_ref, b_ref, o_ref, *, compute_dtype):
    # x_ref: (tm, H)  w_ref: (H, Vp)  b_ref: (1, Vp)  o_ref: (tm, Vp)
    x = x_ref[...]
    w = w_ref[...]
    if compute_dtype is not None:   # opt-in bf16 MXU feed (flag numerics!)
        x = x.astype(compute_dtype)
        w = w.astype(compute_dtype)
    logits = jnp.dot(x, w, preferred_element_type=jnp.float32)
    logits = logits + b_ref[...].astype(jnp.float32)
    m = jnp.max(logits, axis=-1, keepdims=True)
    # Only `logits` stays live as a (tm, Vp) f32 temp; the exp temp lives
    # inside the reduction.
    denom = m + jnp.log(jnp.sum(jnp.exp(logits - m), axis=-1, keepdims=True))
    o_ref[...] = (logits - denom).astype(o_ref.dtype)


def _vtiled_kernel(x_ref, w_ref, b_ref, o_ref, logits_ref, m_ref, l_ref, *,
                   compute_dtype):
    # grid = (row tiles, vocab tiles); vocab tiles innermost ("arbitrary").
    # x_ref: (tm, H)  w_ref: (H, tv)  b_ref: (1, tv)  o_ref: (tm, Vp)
    # logits_ref: (nv, tm, tv) f32   m_ref/l_ref: (tm, 1) f32
    k = pl.program_id(1)
    nv = logits_ref.shape[0]
    tv = logits_ref.shape[2]

    @pl.when(k == 0)
    def _():
        m_ref[...] = jnp.full_like(m_ref, -jnp.inf)
        l_ref[...] = jnp.zeros_like(l_ref)

    x = x_ref[...]
    w = w_ref[...]
    if compute_dtype is not None:
        x = x.astype(compute_dtype)
        w = w.astype(compute_dtype)
    logits = jnp.dot(x, w, preferred_element_type=jnp.float32)
    logits = logits + b_ref[...].astype(jnp.float32)
    logits_ref[k] = logits                       # stash raw logits (f32)

    m_prev = m_ref[...]
    m_new = jnp.maximum(m_prev, jnp.max(logits, axis=-1, keepdims=True))
    l_ref[...] = (l_ref[...] * jnp.exp(m_prev - m_new)
                  + jnp.sum(jnp.exp(logits - m_new), axis=-1, keepdims=True))
    m_ref[...] = m_new

    @pl.when(k == nv - 1)
    def _():
        denom = m_ref[...] + jnp.log(l_ref[...])
        for j in range(nv):                      # static unroll, lane-dense
            o_ref[:, j * tv:(j + 1) * tv] = (
                logits_ref[j] - denom).astype(o_ref.dtype)


# ---------------------------------------------------------------------------
# Tile / VMEM planning
# ---------------------------------------------------------------------------
def _resident_need(tm, H, Vp, x_isz, w_isz, out_isz):
    return (H * Vp * w_isz           # resident weight (single-buffered)
            + 8 * Vp * w_isz         # bias row (sublane-padded)
            + 2 * tm * H * x_isz     # double-buffered x tile
            + 2 * tm * Vp * out_isz  # double-buffered output tile
            + 2 * tm * Vp * 4)       # f32 logits + one live f32 temp


def _vtiled_need(tm, tv, H, Vp, x_isz, w_isz, out_isz):
    return (2 * H * tv * w_isz       # double-buffered streamed weight tile
            + 2 * 8 * tv * w_isz     # double-buffered bias tile
            + 2 * tm * H * x_isz     # double-buffered x tile
            + 2 * tm * Vp * out_isz  # double-buffered full-width output block
            + tm * Vp * 4            # f32 logits stash (nv, tm, tv)
            + 2 * tm * tv * 4)       # live f32 logits tile + exp temp


def _pick_tm(M, fits):
    """Largest row tile that fits with <= 12.5% padded rows; >= 2 grid steps
    when there is enough work so a 2-TC chip (v7x) shards the row axis."""
    chosen = None
    for tm in _TM_CANDIDATES:
        if not fits(tm):
            continue
        Mp = _round_up(M, tm)
        if (Mp - M) * 8 > M and tm > 8:          # > 12.5% wasted rows
            continue
        chosen = tm
        break
    if chosen is None:
        for tm in reversed(_TM_CANDIDATES):
            if fits(tm):
                chosen = tm
                break
    if chosen is None:
        chosen = 8
    while chosen > 8 and _round_up(M, chosen) // chosen < 2 and M > 8:
        chosen //= 2                              # avoid a single-step grid
    return chosen


def _select_plan(M, H, Vp, x_isz, w_isz, out_isz, budget):
    res_need = lambda tm: _resident_need(tm, H, Vp, x_isz, w_isz, out_isz)
    if res_need(8) <= budget:
        tm = _pick_tm(M, lambda t: res_need(t) <= budget)
        return "resident", tm, Vp, res_need(tm)

    # Resident weight does not fit (large H*Vp) -> stream vocab tiles.
    nv_cands = [n for n in (2, 4, 8, 16, 32, 64)
                if Vp % n == 0 and (Vp // n) % 128 == 0]
    vt_need = lambda tm, tv: _vtiled_need(tm, tv, H, Vp, x_isz, w_isz, out_isz)

    def best_nv(tm):
        for n in nv_cands:                        # smallest nv => largest tv
            if vt_need(tm, Vp // n) <= budget:
                return n
        return None

    if nv_cands:
        tm = _pick_tm(M, lambda t: best_nv(t) is not None)
        nv = best_nv(tm)
        if nv is None:                            # nothing fits: smallest tiles
            nv, tm = nv_cands[-1], 8
        tv = Vp // nv
        return "vtiled", tm, tv, vt_need(tm, tv)

    # Vocab cannot be split further; fall back to the resident layout.
    return "resident", 8, Vp, res_need(8)


# ---------------------------------------------------------------------------
# Forward
# ---------------------------------------------------------------------------
@functools.partial(
    jax.jit,
    static_argnames=("output_size", "out_dtype", "compute_dtype",
                     "vmem_budget_bytes"))
def generator_forward(x, w, b, *, output_size=None, out_dtype=None,
                      compute_dtype=None, vmem_budget_bytes=None):
    """log_softmax(x @ w + b, axis=-1).

    x: (..., H); w: (H, V) (transposed vs torch.nn.Linear.weight); b: (V,).
    For production use, pre-pad params once with `pad_generator_params` and
    pass the true vocab via `output_size` so no per-call HBM pad copy is made.
    `out_dtype` (e.g. bf16) halves the dominant output writeback;
    `compute_dtype=jnp.bfloat16` feeds the MXU in bf16 (changes numerics).
    """
    orig_shape = x.shape
    H = orig_shape[-1]
    V_stored = w.shape[-1]
    V = V_stored if output_size is None else output_size
    out_dtype = x.dtype if out_dtype is None else jnp.dtype(out_dtype)

    x2 = x.reshape(-1, H)
    M = x2.shape[0]

    # Lane-dense vocab axis (no-op if params were pre-padded).
    Vp = _round_up(V_stored, 128)
    if Vp != V_stored:
        w = jnp.pad(w, ((0, 0), (0, Vp - V_stored)))
        b = jnp.pad(b, (0, Vp - V_stored),
                    constant_values=_pad_bias_value(b.dtype))
    b2 = b.reshape(1, Vp)

    # Plan against the physical per-core VMEM capacity.
    vmem_cap = _vmem_capacity_bytes()
    budget = (vmem_cap - _HEADROOM_BYTES if vmem_budget_bytes is None
              else int(vmem_budget_bytes))
    kind, tm, tv, need = _select_plan(
        M, H, Vp, x2.dtype.itemsize, w.dtype.itemsize, out_dtype.itemsize,
        budget)

    Mp = _round_up(M, tm)
    if Mp != M:
        x2 = jnp.pad(x2, ((0, Mp - M), (0, 0)))

    vmem_limit = int(min(vmem_cap - 2 * 2**20,
                         max(need + 4 * 2**20, 32 * 2**20)))

    if kind == "resident":
        out = pl.pallas_call(
            functools.partial(_resident_kernel, compute_dtype=compute_dtype),
            out_shape=jax.ShapeDtypeStruct((Mp, Vp), out_dtype),
            grid_spec=pltpu.PrefetchScalarGridSpec(
                num_scalar_prefetch=0,
                grid=(Mp // tm,),
                in_specs=[
                    pl.BlockSpec((tm, H), lambda i: (i, 0)),      # x row tile
                    pl.BlockSpec((H, Vp), lambda i: (0, 0),
                                 pipeline_mode=pl.Buffered(1)),   # resident W
                    pl.BlockSpec((1, Vp), lambda i: (0, 0),
                                 pipeline_mode=pl.Buffered(1)),   # resident b
                ],
                out_specs=pl.BlockSpec((tm, Vp), lambda i: (i, 0)),
            ),
            compiler_params=pltpu.CompilerParams(
                dimension_semantics=("parallel",),
                vmem_limit_bytes=vmem_limit),
        )(x2, w, b2)
    else:
        nv = Vp // tv
        out = pl.pallas_call(
            functools.partial(_vtiled_kernel, compute_dtype=compute_dtype),
            out_shape=jax.ShapeDtypeStruct((Mp, Vp), out_dtype),
            grid_spec=pltpu.PrefetchScalarGridSpec(
                num_scalar_prefetch=0,
                grid=(Mp // tm, nv),
                in_specs=[
                    pl.BlockSpec((tm, H), lambda i, k: (i, 0)),   # x row tile
                    pl.BlockSpec((H, tv), lambda i, k: (0, k)),   # W vocab tile
                    pl.BlockSpec((1, tv), lambda i, k: (0, k)),   # b vocab tile
                ],
                out_specs=pl.BlockSpec((tm, Vp), lambda i, k: (i, 0)),
                scratch_shapes=[
                    pltpu.VMEM((nv, tm, tv), jnp.float32),  # raw logits stash
                    pltpu.VMEM((tm, 1), jnp.float32),       # running max
                    pltpu.VMEM((tm, 1), jnp.float32),       # running sum
                ],
            ),
            compiler_params=pltpu.CompilerParams(
                dimension_semantics=("parallel", "arbitrary"),
                vmem_limit_bytes=vmem_limit),
        )(x2, w, b2)

    # TODO(synk): optionally fuse the downstream consumer (NLL gather / argmax)
    # inside the kernel to avoid the (M, V) log-prob writeback entirely.

    if Mp != M or Vp != V:
        out = out[:M, :V]
    return out.reshape(*orig_shape[:-1], V)


# ---------------------------------------------------------------------------
# Parameter helpers
# ---------------------------------------------------------------------------
def pad_generator_params(w, b):
    """One-time pad of the vocab axis to a multiple of 128 (lane-dense tiles).

    Call at parameter-setup time so generator_forward makes no per-call HBM
    pad copies. Padded columns get a very negative bias so they vanish from
    the softmax."""
    V = w.shape[-1]
    Vp = _round_up(V, 128)
    if Vp == V:
        return w, b
    w = jnp.pad(w, ((0, 0), (0, Vp - V)))
    b = jnp.pad(b, (0, Vp - V), constant_values=_pad_bias_value(b.dtype))
    return w, b


def init_generator_params(key, hidden_size, output_size, dtype=jnp.float32):
    # Mirrors nn.Linear default init: U(-1/sqrt(in), 1/sqrt(in)) for W and b.
    kw, kb = jax.random.split(key)
    bound = 1.0 / float(hidden_size) ** 0.5
    # Stored transposed relative to PyTorch: (hidden, output) so the kernel
    # computes x @ W directly.
    w = jax.random.uniform(kw, (hidden_size, output_size), dtype,
                           minval=-bound, maxval=bound)
    b = jax.random.uniform(kb, (output_size,), dtype,
                           minval=-bound, maxval=bound)
    return w, b


if __name__ == "__main__":
    batch, seq, hidden, vocab = 2, 8, 32, 64

    key = jax.random.PRNGKey(0)
    kx, kp = jax.random.split(key)
    x = jax.random.normal(kx, (batch, seq, hidden), jnp.float32)
    w, b = init_generator_params(kp, hidden, vocab)
    wp, bp = pad_generator_params(w, b)          # one-time pad, not per call

    ref = jax.nn.log_softmax(x @ w + b, axis=-1)

    # Resident-weight path (small vocab).
    y = generator_forward(x, wp, bp, output_size=vocab)
    y = jax.block_until_ready(y)
    assert y.shape == (batch, seq, vocab)
    assert jnp.allclose(y, ref, atol=1e-4, rtol=1e-4)
    assert jnp.allclose(jnp.sum(jnp.exp(y), axis=-1), 1.0, atol=1e-3)

    # V-tiled online-logsumexp path (forced via a tiny planning budget so the
    # large-vocab code path is exercised at small test shapes).
    hidden2, vocab2 = 64, 512
    kx2, kp2 = jax.random.split(jax.random.PRNGKey(1))
    x2 = jax.random.normal(kx2, (batch, seq, hidden2), jnp.float32)
    w2, b2 = init_generator_params(kp2, hidden2, vocab2)
    ref2 = jax.nn.log_softmax(x2 @ w2 + b2, axis=-1)
    y2 = generator_forward(x2, w2, b2, vmem_budget_bytes=150_000)
    y2 = jax.block_until_ready(y2)
    assert y2.shape == (batch, seq, vocab2)
    assert jnp.allclose(y2, ref2, atol=1e-4, rtol=1e-4)
    assert jnp.allclose(jnp.sum(jnp.exp(y2), axis=-1), 1.0, atol=1e-3)

    print("KERNEL_OK")
</pallas_src>

<mosaic_0001>
module attributes {stable_mosaic.version = 11 : i64} {
  func.func @_resident_kernel(%arg0: i32, %arg1: memref<8x32xf32, #tpu.memory_space<vmem>>, %arg2: memref<32x128xf32, #tpu.memory_space<vmem>>, %arg3: memref<1x128xf32, #tpu.memory_space<vmem>>, %arg4: memref<8x128xf32, #tpu.memory_space<vmem>>) attributes {dimension_semantics = [#tpu.dimension_semantics<parallel>], iteration_bounds = array<i64: 2>, scalar_prefetch = 0 : i64, scratch_operands = 0 : i64, tpu.core_type = #tpu.core_type<tc>, window_params = [{transform_indices = @transform_0, window_bounds = array<i64: 8, 32>}, {pipeline_mode = #tpu.pipeline_mode<synchronous>, transform_indices = @transform_1, window_bounds = array<i64: 32, 128>}, {pipeline_mode = #tpu.pipeline_mode<synchronous>, transform_indices = @transform_2, window_bounds = array<i64: 1, 128>}, {transform_indices = @transform_3, window_bounds = array<i64: 8, 128>}]} {
    %c0 = arith.constant 0 : index
    %c0_0 = arith.constant 0 : index
    %0 = vector.load %arg1[%c0, %c0_0] : memref<8x32xf32, #tpu.memory_space<vmem>>, vector<8x32xf32>
    %c0_1 = arith.constant 0 : index
    %c0_2 = arith.constant 0 : index
    %1 = vector.load %arg2[%c0_1, %c0_2] : memref<32x128xf32, #tpu.memory_space<vmem>>, vector<32x128xf32>
    %cst = arith.constant dense<0.000000e+00> : vector<8x128xf32>
    %2 = tpu.matmul %0, %1, %cst {dimension_numbers = #tpu.dot_dimension_numbers<[1], [0], [0], [1], [0, 0, 1, 1], [], []>} : vector<8x32xf32>, vector<32x128xf32>, vector<8x128xf32> -> vector<8x128xf32>
    %c0_3 = arith.constant 0 : index
    %c0_4 = arith.constant 0 : index
    %3 = vector.load %arg3[%c0_3, %c0_4] : memref<1x128xf32, #tpu.memory_space<vmem>>, vector<1x128xf32>
    %4 = vector.broadcast %3 : vector<1x128xf32> to vector<8x128xf32>
    %5 = arith.addf %2, %4 : vector<8x128xf32>
    %cst_5 = arith.constant dense<0xFF800000> : vector<8xf32>
    %6 = vector.multi_reduction <maximumf>, %5, %cst_5 [1] : vector<8x128xf32> to vector<8xf32>
    %7 = vector.shape_cast %6 : vector<8xf32> to vector<8x1xf32>
    %8 = vector.broadcast %7 : vector<8x1xf32> to vector<8x128xf32>
    %9 = arith.subf %5, %8 : vector<8x128xf32>
    %10 = math.exp %9 : vector<8x128xf32>
    %cst_6 = arith.constant dense<0.000000e+00> : vector<8xf32>
    %11 = vector.multi_reduction <add>, %10, %cst_6 [1] : vector<8x128xf32> to vector<8xf32>
    %12 = vector.shape_cast %11 : vector<8xf32> to vector<8x1xf32>
    %13 = math.log %12 : vector<8x1xf32>
    %14 = arith.addf %7, %13 : vector<8x1xf32>
    %15 = vector.broadcast %14 : vector<8x1xf32> to vector<8x128xf32>
    %16 = arith.subf %5, %15 : vector<8x128xf32>
    %c0_7 = arith.constant 0 : index
    %c0_8 = arith.constant 0 : index
    %17 = vector.load %arg4[%c0_7, %c0_8] : memref<8x128xf32, #tpu.memory_space<vmem>>, vector<8x128xf32>
    tpu.vector_store %arg4[%c0_7, %c0_8], %16 {strides = array<i32>} : memref<8x128xf32, #tpu.memory_space<vmem>>, vector<8x128xf32>,
    return
  }
  func.func @transform_0(%arg0: i32) -> (i32, i32) {
    %c0_i32 = arith.constant 0 : i32
    %c0_i32_0 = arith.constant 0 : i32
    return %arg0, %c0_i32 : i32, i32
  }
  func.func @transform_1(%arg0: i32) -> (i32, i32) {
    %c0_i32 = arith.constant 0 : i32
    %c0_i32_0 = arith.constant 0 : i32
    %c0_i32_1 = arith.constant 0 : i32
    return %c0_i32, %c0_i32_0 : i32, i32
  }
  func.func @transform_2(%arg0: i32) -> (i32, i32) {
    %c0_i32 = arith.constant 0 : i32
    %c0_i32_0 = arith.constant 0 : i32
    %c0_i32_1 = arith.constant 0 : i32
    return %c0_i32, %c0_i32_0 : i32, i32
  }
  func.func @transform_3(%arg0: i32) -> (i32, i32) {
    %c0_i32 = arith.constant 0 : i32
    %c0_i32_0 = arith.constant 0 : i32
    return %arg0, %c0_i32 : i32, i32
  }
}

</mosaic_0001>

<bundles_post_ra>
// kernel: generator_forward.1
= control target key start
LH: loop header
LB: loop body
LE: loop exit
PB: predicated region body
PF: predicated region fallthrough
CT: control target
= control target key end

     0   :  { %8 = vsyncpa [#allocation3], 0  ;;  %s624_s0 = inlined_call_operand.hbm [shape: f32[16,32], index: 0, kind: input, shape index: {}]   ;;  %s625_s1 = inlined_call_operand.hbm [shape: f32[32,128], index: 1, kind: input, shape index: {}]   ;;  %s626_s2 = inlined_call_operand.vmem [shape: f32[1,128], index: 2, kind: input, shape index: {}]   ;;  %s627_s3 = inlined_call_operand.vmem [shape: f32[16,128], index: 3, kind: output, shape index: {}]  }
   0x1   :  { %10 = vsyncpa [#allocation3 + $0x1], 0 }
   0x2   :  { %11 = vsyncpa [#allocation5], 0  ;;  %s518_s12 = smov 0   ;;  %s520_s13 = smov 0  }
   0x3   :  { %s522_s14 = smov 0   ;;  %s524_s15 = smov 0  }
   0x4 LB: > { %s127_s18 = sshll.u32 %s625_s1, 4  ;;  %s540_s19 = sadd.s32 4294967295, %s493_s15   ;;  %s493_s15 = sphi %s524_s15, %s634_s15   ;;  %s489_s14 = sphi %s522_s14, %s633_s14   ;;  %s485_s13 = sphi %s520_s13, %s632_s13   ;;  %s481_s12 = sphi %s518_s12, %s631_s12   ;;  %s128_s18 = int_to_ptr.hbm [resolvable:$true] %s127_s18 }
   0x5   : > { %p326_p0 = scmp.ge.s32.totalorder %s493_s15, 1  ;;  %p38_p1 = scmp.eq.s32.totalorder %s540_s19, 0 }
   0x6   : > { %p116_p2 = scmp.lt.s32.totalorder %s493_s15, 3  ;;  %s495_s21 = smov [#allocation4]  }
   0x7   : > { %s129_s22 = sshll.u32 %s495_s21, 4  ;;  %s496_s23 = smov 128   ;;  %s130_s22 = int_to_ptr.vmem [resolvable:$true] %s129_s22 }
   0x8   : > { %p545_p3 = pnand %p326_p0, %p116_p2  ;;  %s497_s24 = smov 8  }
   0x9   : > { %s554_s25 = sadd.s32 1, %s493_s15   ;;  %s24_s27 = sadd.s32 1, %s489_s14 }
   0xa   : > { %p344_p4 = pneg %p545_p3  ;;  %s21_s26 = ssub.s32 %s493_s15, %s554_s25 }
   0xb   : > { %p22_p6 = scmp.eq.s32.totalorder %s21_s26, 0  ;;  %p31_p7 = scmp.ne.s32.totalorder %s489_s14, %s485_s13 }
   0xc   : > { %p345_p5 = pnand %p344_p4, %p38_p1  ;;  %p32_p8 = scmp.eq.s32.totalorder %s493_s15, 0 }
   0xd   : > { %p37_p9 = scmp.ne.s32.totalorder %s485_s13, %s481_s12  ;;  %p353_p12 = scmp.lt.s32.totalorder %s493_s15, 2 }
   0xe   : > { %347 = dma.hbm_to_vmem [thread:$0]  (!%p345_p5), %s128_s18, 512, %s130_s22, [#allocation5], %s496_s23, %s496_s23, %s497_s24  }
   0xf   : > { %s564_s28 = scalar_select %p22_p6, %s489_s14, %s24_s27  }
  0x10   : > { %p33_p10 = por %p32_p8, %p31_p7  ;;  %p568_p11 = por %p38_p1, %p37_p9 }
  0x11   : > { %s146_s30 = sand.u32 1, %s489_s14   ;;  %s330_s5 = sshll.u32 %s493_s15, 3 }
  0x12   : > { %s329_s4 = sshll.u32 %s146_s30, 3  ;;  %s154_s8 = scalar_lea.hbm %s624_s0, %s330_s5 }
  0x13   : > { %s150_s9 = scalar_lea.vmem [#allocation2], %s329_s4  ;;  %s156_s11 = sshll.u32 %s154_s8, 4  ;;  %s157_s11 = int_to_ptr.hbm [resolvable:$true] %s156_s11 }
  0x14   : > { %s158_s10 = sshll.u32 %s150_s9, 4  ;;  %p578_p13 = pnand %p353_p12, %p33_p10  ;;  %s159_s10 = int_to_ptr.vmem [resolvable:$true] %s158_s10 }
  0x15   : > { %s147_s16 = scalar_lea.sflag [#allocation3], %s146_s30  ;;  %s425_s17 = sshra.s32 %s157_s11, 4  ;;  %s426_s17 = int_to_ptr.hbm [resolvable:$true] %s425_s17 }
  0x16   : > { %s427_s18 = scalar_lea.hbm %s426_s17, 8  ;;  %p429_p2 = pneg %p578_p13 }
  0x17   : > { %p428_p0 = scmp.ne.s32.totalorder %s426_s17, %s427_s18  ;;  %s432_s22 = scalar_lea.hbm %s624_s0, 16 }
  0x18   : > { %p433_p6 = scmp.lt.s32.totalorder %s426_s17, %s624_s0  ;;  %p434_p7 = scmp.lt.s32.totalorder %s432_s22, %s427_s18 }
  0x19   : > { %p430_p4 = pnand %p429_p2, %p428_p0 }
  0x1a   : > { %p435_p8 = por %p434_p7, %p433_p6 }
  0x1b   : > { %p431_p5 = pneg %p430_p4 }
  0x1d   : > { %p436_p9 = pnand %p435_p8, %p431_p5 }
  0x1f   : > { %439 = shalt.err (!%p436_p9)
}
  0x20   : > { %351 = dma.hbm_to_vmem [thread:$0]  (!%p578_p13), %s157_s11, 128, %s159_s10, %s147_s16  }
  0x21   : > { %167 = sbr.rel (%p545_p3) target bundleno = 434 (0x1b2), region = 32  ;;  %s169_s26 = sand.u32 (!%p545_p3), 1, %s485_s13  }
  0x22   : > { %s332_s27 = sshll.u32 (!%p545_p3), %s169_s26, 3  ;;  %s170_s30 = scalar_lea.sflag (!%p545_p3), [#allocation3], %s169_s26 }
  0x23   : > { %s173_s4 = scalar_lea.vmem (!%p545_p3), [#allocation2], %s332_s27 }
  0x26   : > { %472 = dma.done.wait (%p568_p11), %s170_s30, 128  }
  0x27   : > { %474 = vsyncadd (%p568_p11), %s170_s30, 4294967168 }
  0x28   : > { %476 = dma.done.wait (%p38_p1), [#allocation5], 512  }
  0x29   : > { %478 = vsyncadd (%p38_p1), [#allocation5], 4294966784  ;;  %v209_v0 = vld [vmem:[#allocation4 + $0x18] sm:$0xff]  ;;  %v208_v1 = vld [vmem:[#allocation4 + $0x10] sm:$0xff]  ;;  %vm214_vm0 = vcmask 261120   ;;  %p201_p1 = scmp.lt.s32.totalorder %s540_s19, 1 }
  0x2a   : > { %230 = vmatpush.msra.mxu0 %v209_v0  ;;  %v207_v2 = vld [vmem:[#allocation4 + $0x8] sm:$0xff]  ;;  %v206_v3 = vld [vmem:[#allocation4] sm:$0xff]  ;;  %v205_v4 = vld [vmem:[%s173_s4] sm:$0xff] }
  0x2b   : > { %v390_v5 = vld [vmem:[%s626_s2] ss:$0 sm:$0xff]  ;;  %s636_s19 = smov (!%p201_p1, %s540_s19), 1 }
  0x2c   : > { %231 = vmatpush.msra.mxu0 %v208_v1  ;;  %s334_s5 = sshll.u32 %s636_s19, 3 }
  0x2d   : > { %s204_s8 = scalar_lea.vmem %s627_s3, %s334_s5 }
  0x2e   : > { %232 = vmatpush.msra.mxu0 %v207_v2 }
  0x30   : > { %233 = vmatpush.msra.mxu0 %v206_v3 }
  0x31   : > { %335 = vmatmul.msk.f32.vlgmr.msra.gmra.mxu0 %vm214_vm0, %v205_v4 }
  0xae   : > { %v235_v6 = vpop.f32.mrf.mxu0 }
  0xaf   : > { %v236_v7 = vadd.f32 %v390_v5, %v235_v6 }
  0xb1   : > { %238 = vmax.xlane.f32.xlu0 %v236_v7 }
 0x124   : > { %v239_v8 = vpop.xlane.xlu0 %238 }
 0x125   : > { %v240_v9 = vsub.f32 %v236_v7, %v239_v8 }
 0x127   : > { %v241_v10 = vmul.f32 1.442695, %v240_v9 }
 0x129   : > { %391 = vpow2.f32 %v241_v10 }
 0x12f   : > { %v392_v11 = vpop.eup %391 }
 0x130   : > { %243 = vadd.xlane.f32.xlu0 %v392_v11 }
 0x1a3   : > { %v244_v12 = vpop.xlane.xlu0 %243 }
 0x1a4   : > { %393 = vlog2.f32 %v244_v12 }
 0x1aa   : > { %v394_v13 = vpop.eup %393 }
 0x1ab   : > { %v246_v14 = vmul.f32 0.6931472, %v394_v13 }
 0x1ad   : > { %v247_v15 = vadd.f32 %v246_v14, %v239_v8 }
 0x1af   : > { %v248_v16 = vsub.f32 %v236_v7, %v247_v15 }
 0x1b1   : > { %249 = vst [vmem:[%s204_s8] sm:$0xff] %v248_v16 }
 0x1b2 PF: > { %p14_p3 = scmp.ge.s32.totalorder %s554_s25, 4   ;;  %s631_s12 = smov %s485_s13 }
 0x1b3   : > { %s632_s13 = smov %s489_s14  ;;  %s633_s14 = smov %s564_s28 }
 0x1b4   : > { %s634_s15 = smov %s554_s25  ;;  %16 = sbr.rel (!%p14_p3) target bundleno = 4 (0x4), region = 76 }
 0x1b9   :  { %269 = vsyncpa [#allocation3], 1 }
 0x1ba   :  { %271 = vsyncpa [#allocation3 + $0x1], 1 }
 0x1bb   :  { %272 = vsyncpa [#allocation5], 1 }

</bundles_post_ra>
